<compile_context>
chip_gen: v6e
topology: v6e:2x2x1
jax: 0.10.0
libtpu: 0.0.40
codegen_flags: <defaults>
</compile_context>

<pallas_src>
import numpy as np
import jax
import jax.numpy as jnp
from jax import lax
from jax.experimental import pallas as pl
from jax.experimental.pallas import tpu as pltpu

_H1, _H2, _H3 = 512, 256, 64   # regressor hidden sizes (from the module)
_NPOOL = 21                    # 1*1 + 2*2 + 4*4 pooled positions per channel


# ----------------------------------------------------------------------------
# Small helpers (host-side, trace-time).
# ----------------------------------------------------------------------------
def _pool_pad_cols(C):
    """Pad 21 pool columns so C * cols is a multiple of 128 (lane-aligned K)."""
    cols = _NPOOL
    while (cols * C) % 128 != 0 and cols < _NPOOL + 128:
        cols += 1
    return cols


def _spatial_conv_matrix(conv_w, H, W):
    """SpatialAttention 7x7 conv (padding=3, bias=False) as ONE (2*HW, HW) matmul."""
    cw = np.asarray(conv_w)                      # (1, 2, k, k) OIHW
    k = cw.shape[-1]
    pad = k // 2
    K = np.zeros((2, H * W, H * W), dtype=np.float32)
    for h in range(H):                           # output positions
        for w in range(W):
            for kh in range(k):
                for kw in range(k):
                    hp, wp = h + kh - pad, w + kw - pad
                    if 0 <= hp < H and 0 <= wp < W:
                        K[:, hp * W + wp, h * W + w] = cw[0, :, kh, kw]
    return np.concatenate([K[0], K[1]], axis=0)  # rows: [avg-channel | max-channel]


def _pool_matrix(H, W, np_cols):
    """AdaptiveAvgPool2d to 1x1 / 2x2 / 4x4 as one (HW, np_cols) matmul (zero-padded)."""
    cols = []
    for k in (1, 2, 4):
        bh, bw = H // k, W // k
        P = np.zeros((H * W, k * k), dtype=np.float32)
        for h in range(H):
            for w in range(W):
                P[h * W + w, (h // bh) * k + (w // bw)] = 1.0 / (bh * bw)
        cols.append(P)
    P = np.concatenate(cols, axis=1)             # (HW, 21)
    if np_cols > _NPOOL:
        P = np.concatenate([P, np.zeros((H * W, np_cols - _NPOOL), np.float32)], 1)
    return P


def _w1_permutation(C, np_cols):
    """Row permutation mapping PyTorch [global|pool2|pool4] ordering of w1 onto the
    kernel-1 output ordering (channel-major, np_cols per channel, pads -> zero row)."""
    sentinel = _NPOOL * C                        # index of appended zero row
    idx = np.full((C * np_cols,), sentinel, dtype=np.int32)
    for c in range(C):
        base = c * np_cols
        idx[base] = c                                            # global pool
        idx[base + 1: base + 5] = C + c * 4 + np.arange(4)       # 2x2 pool
        idx[base + 5: base + 21] = 5 * C + c * 16 + np.arange(16)  # 4x4 pool
    return idx


def _sigmoid(v):
    # exp + approx reciprocal both land on the (otherwise idle) EUP slot.
    return pl.reciprocal(1.0 + jnp.exp(-v), approx=True)


# ----------------------------------------------------------------------------
# Kernel 1: channel attention + spatial attention + multi-scale avg pooling.
# One grid step == one batch block of Bblk elements.
# ----------------------------------------------------------------------------
def _attn_pool_kernel(x_ref, caw1_ref, cab1_ref, caw2_ref, cab2_ref,
                      ksa_ref, kpool_ref, out_ref):
    x = x_ref[...].astype(jnp.float32)                      # (Bb, C, HW)
    Bb = x.shape[0]

    # ---- Channel attention: avg & max stats fused into a single (C, 2)
    #      operand -> one pair of matmuls instead of two FC passes. ----------
    avg_c = jnp.mean(x, axis=-1, keepdims=True)             # (Bb, C, 1)
    max_c = jnp.max(x, axis=-1, keepdims=True)              # (Bb, C, 1)
    zc = jnp.concatenate([avg_c, max_c], axis=-1).astype(jnp.bfloat16)  # (Bb, C, 2)

    w1b = jnp.broadcast_to(caw1_ref[...], (Bb,) + tuple(caw1_ref.shape))  # (Bb, Cr, C)
    h = jnp.einsum('brc,bcx->brx', w1b, zc, preferred_element_type=jnp.float32)
    h = jnp.maximum(h + cab1_ref[...], 0.0)                 # (Bb, Cr, 2)

    w2b = jnp.broadcast_to(caw2_ref[...], (Bb,) + tuple(caw2_ref.shape))  # (Bb, C, Cr)
    o = jnp.einsum('bkr,brx->bkx', w2b, h.astype(jnp.bfloat16),
                   preferred_element_type=jnp.float32) + cab2_ref[...]    # (Bb, C, 2)
    ca = _sigmoid(o[..., 0:1] + o[..., 1:2])                # (Bb, C, 1)
    x = x * ca

    # ---- Spatial attention: [avg | max] concatenated along lanes and pushed
    #      through ONE merged (2*HW, HW) conv-as-matmul. ----------------------
    s_avg = jnp.mean(x, axis=1, keepdims=True)              # (Bb, 1, HW)
    s_max = jnp.max(x, axis=1, keepdims=True)               # (Bb, 1, HW)
    s = jnp.concatenate([s_avg, s_max], axis=-1).astype(jnp.bfloat16)     # (Bb, 1, 2HW)
    kb = jnp.broadcast_to(ksa_ref[...], (Bb,) + tuple(ksa_ref.shape))     # (Bb, 2HW, HW)
    conv = jnp.einsum('bxh,bhp->bxp', s, kb, preferred_element_type=jnp.float32)
    sa = _sigmoid(conv)                                     # (Bb, 1, HW)
    x = x * sa

    # ---- Multi-scale pooling (1x1 | 2x2 | 4x4) as one batched matmul whose
    #      row-major flatten is directly the regressor input (lane-padded). --
    pb = jnp.broadcast_to(kpool_ref[...], (Bb,) + tuple(kpool_ref.shape))  # (Bb, HW, NP)
    pooled = jnp.einsum('bch,bhp->bcp', x.astype(jnp.bfloat16), pb,
                        preferred_element_type=jnp.float32)                # (Bb, C, NP)
    out_ref[...] = pooled.astype(out_ref.dtype)


# ----------------------------------------------------------------------------
# Kernel 2: deep regression head. The first (big) matmul is K-tiled over the
# grid with an f32 VMEM accumulator; the small tail runs at the last K step.
# ----------------------------------------------------------------------------
def _regressor_kernel(f_ref, w1_ref, sc1_ref, sh1_ref, w2_ref, sc2_ref, sh2_ref,
                      w3_ref, b3_ref, w4_ref, b4_ref, out_ref, acc_ref):
    k = pl.program_id(0)

    @pl.when(k == 0)
    def _():
        acc_ref[...] = jnp.zeros_like(acc_ref)

    acc_ref[...] += jnp.dot(f_ref[...], w1_ref[...],
                            preferred_element_type=jnp.float32)

    @pl.when(k == pl.num_programs(0) - 1)
    def _():
        # Linear1 bias + BN1(eval) + ReLU (Dropout = identity)
        h = jnp.maximum(acc_ref[...] * sc1_ref[...] + sh1_ref[...], 0.0)
        # Linear2 + BN2(eval) + ReLU
        h = jnp.dot(h.astype(jnp.bfloat16), w2_ref[...],
                    preferred_element_type=jnp.float32)
        h = jnp.maximum(h * sc2_ref[...] + sh2_ref[...], 0.0)
        # Linear3 + ReLU
        h = jnp.dot(h.astype(jnp.bfloat16), w3_ref[...],
                    preferred_element_type=jnp.float32) + b3_ref[...]
        h = jnp.maximum(h, 0.0)
        # Linear4
        y = jnp.dot(h.astype(jnp.bfloat16), w4_ref[...],
                    preferred_element_type=jnp.float32) + b4_ref[...]
        out_ref[...] = y.astype(out_ref.dtype)


# ----------------------------------------------------------------------------
# Parameter setup (plain numpy / JAX glue).
# ----------------------------------------------------------------------------
def init_params(key, C, H, W, reduction=16):
    Cr = max(C // reduction, 1)
    total = _NPOOL * C
    np_cols = _pool_pad_cols(C)
    ks = jax.random.split(key, 12)

    def nrm(k, shape, scale=0.05):
        return (scale * jax.random.normal(k, shape)).astype(jnp.float32)

    sa_conv = nrm(ks[4], (1, 2, 7, 7), 0.1)       # Conv2d(2, 1, 7, pad=3, bias=False)
    w1 = nrm(ks[5], (total, _H1))

    params = dict(
        # ChannelAttention fc: Linear(C, C//16), ReLU, Linear(C//16, C)
        ca_w1=nrm(ks[0], (Cr, C)), ca_b1=nrm(ks[1], (Cr,), 0.01),
        ca_w2=nrm(ks[2], (C, Cr)), ca_b2=nrm(ks[3], (C,), 0.01),
        sa_conv=sa_conv,
        # regressor Linears stored as (in, out)
        w1=w1, b1=nrm(ks[6], (_H1,), 0.01),
        w2=nrm(ks[7], (_H1, _H2)), b2=nrm(ks[8], (_H2,), 0.01),
        w3=nrm(ks[9], (_H2, _H3)), b3=nrm(ks[10], (_H3,), 0.01),
        w4=nrm(ks[11], (_H3, 1)), b4=jnp.zeros((1,), jnp.float32),
        # BatchNorm1d params at PyTorch defaults (eval mode)
        bn1_g=jnp.ones((_H1,), jnp.float32), bn1_b=jnp.zeros((_H1,), jnp.float32),
        bn1_rm=jnp.zeros((_H1,), jnp.float32), bn1_rv=jnp.ones((_H1,), jnp.float32),
        bn2_g=jnp.ones((_H2,), jnp.float32), bn2_b=jnp.zeros((_H2,), jnp.float32),
        bn2_rm=jnp.zeros((_H2,), jnp.float32), bn2_rv=jnp.ones((_H2,), jnp.float32),
    )

    # ---- Pallas-side prepared operands (bf16, merged / permuted / padded) ---
    params['k_sa'] = jnp.asarray(_spatial_conv_matrix(sa_conv, H, W), jnp.bfloat16)
    params['k_pool'] = jnp.asarray(_pool_matrix(H, W, np_cols), jnp.bfloat16)
    idx = _w1_permutation(C, np_cols)
    w1_ext = jnp.concatenate([w1, jnp.zeros((1, _H1), jnp.float32)], axis=0)
    params['w1p'] = w1_ext[jnp.asarray(idx)].astype(jnp.bfloat16)   # (C*np_cols, 512)
    return params


# ----------------------------------------------------------------------------
# Forward wrapper.
# ----------------------------------------------------------------------------
def enhanced_regressor_forward(x, params):
    B, C, H, W = x.shape
    HW = H * W
    np_cols = params['k_pool'].shape[1]
    Kp = params['w1p'].shape[0]                  # = C * np_cols, multiple of 128

    xf = x.reshape(B, C, HW).astype(jnp.bfloat16)
    Bblk = next(c for c in (8, 4, 2, 1) if B % c == 0)

    Cr = params['ca_w1'].shape[0]
    caw1 = params['ca_w1'].astype(jnp.bfloat16)            # (Cr, C)
    caw2 = params['ca_w2'].astype(jnp.bfloat16)            # (C, Cr)
    cab1 = params['ca_b1'].reshape(1, Cr, 1)
    cab2 = params['ca_b2'].reshape(1, C, 1)

    full1 = lambda a: pl.BlockSpec(a.shape, lambda b: (0,) * a.ndim)

    pooled = pl.pallas_call(
        _attn_pool_kernel,
        out_shape=jax.ShapeDtypeStruct((B, C, np_cols), jnp.bfloat16),
        grid=(B // Bblk,),
        in_specs=[
            pl.BlockSpec((Bblk, C, HW), lambda b: (b, 0, 0)),
            full1(caw1), full1(cab1), full1(caw2), full1(cab2),
            full1(params['k_sa']), full1(params['k_pool']),
        ],
        out_specs=pl.BlockSpec((Bblk, C, np_cols), lambda b: (b, 0, 0)),
        compiler_params=pltpu.CompilerParams(dimension_semantics=("parallel",)),
    )(xf, caw1, cab1, caw2, cab2, params['k_sa'], params['k_pool'])

    # Free row-major reshape: (B, C, np_cols) -> (B, C*np_cols). Ordering matches
    # the row-permuted/zero-padded w1p built at init, so no concat/slice glue.
    combined = pooled.reshape(B, Kp)

    # Fold eval-mode BatchNorm1d (+ the preceding Linear bias) into scale/shift.
    eps = 1e-5
    s1 = params['bn1_g'] / jnp.sqrt(params['bn1_rv'] + eps)
    sc1 = s1.reshape(1, -1)
    sh1 = ((params['b1'] - params['bn1_rm']) * s1 + params['bn1_b']).reshape(1, -1)
    s2 = params['bn2_g'] / jnp.sqrt(params['bn2_rv'] + eps)
    sc2 = s2.reshape(1, -1)
    sh2 = ((params['b2'] - params['bn2_rm']) * s2 + params['bn2_b']).reshape(1, -1)

    w1p = params['w1p']
    w2 = params['w2'].astype(jnp.bfloat16)
    w3 = params['w3'].astype(jnp.bfloat16)
    w4 = params['w4'].astype(jnp.bfloat16)
    b3 = params['b3'].reshape(1, -1)
    b4 = params['b4'].reshape(1, -1)

    if Kp % 256 == 0:
        TK = 256
    elif Kp % 128 == 0:
        TK = 128
    else:
        TK = Kp
    nk = Kp // TK

    full2 = lambda a: pl.BlockSpec(a.shape, lambda k: (0,) * a.ndim)

    # TODO(synk): on v7x, a second "parallel" grid axis over the 512-wide N dim
    # (or fusing this matmul into kernel 1's batch grid) would use both TCs.
    out = pl.pallas_call(
        _regressor_kernel,
        out_shape=jax.ShapeDtypeStruct((B, 1), jnp.float32),
        grid=(nk,),
        in_specs=[
            pl.BlockSpec((B, TK), lambda k: (0, k)),       # streamed activations
            pl.BlockSpec((TK, _H1), lambda k: (k, 0)),     # streamed w1 tiles
            full2(sc1), full2(sh1), full2(w2), full2(sc2), full2(sh2),
            full2(w3), full2(b3), full2(w4), full2(b4),
        ],
        out_specs=pl.BlockSpec((B, 1), lambda k: (0, 0)),
        scratch_shapes=[pltpu.VMEM((B, _H1), jnp.float32)],
        compiler_params=pltpu.CompilerParams(
            dimension_semantics=("arbitrary",),
            vmem_limit_bytes=32 * 1024 * 1024),
    )(combined, w1p, sc1, sh1, w2, sc2, sh2, w3, b3, w4, b4)
    return out


# ----------------------------------------------------------------------------
# Pure-JAX f32 reference (PyTorch semantics) for verification.
# ----------------------------------------------------------------------------
def reference_forward(x, p):
    B, C, H, W = x.shape
    avg = x.mean(axis=(2, 3))
    mx = x.max(axis=(2, 3))

    def fc(v):
        h = jax.nn.relu(v @ p['ca_w1'].T + p['ca_b1'])
        return h @ p['ca_w2'].T + p['ca_b2']

    ca = jax.nn.sigmoid(fc(avg) + fc(mx))[:, :, None, None]
    x = x * ca
    s_avg = x.mean(axis=1, keepdims=True)
    s_max = x.max(axis=1, keepdims=True)
    cat = jnp.concatenate([s_avg, s_max], axis=1)
    conv = lax.conv_general_dilated(cat, p['sa_conv'], (1, 1), 'SAME',
                                    dimension_numbers=('NCHW', 'OIHW', 'NCHW'))
    x = x * jax.nn.sigmoid(conv)

    def ap(x, k):
        bh, bw = H // k, W // k
        return x.reshape(B, C, k, bh, k, bw).mean(axis=(3, 5))

    f = jnp.concatenate([ap(x, 1).reshape(B, C),
                         ap(x, 2).reshape(B, C * 4),
                         ap(x, 4).reshape(B, C * 16)], axis=1)
    eps = 1e-5

    def bn(h, g, b, rm, rv):
        return (h - rm) / jnp.sqrt(rv + eps) * g + b

    h = jax.nn.relu(bn(f @ p['w1'] + p['b1'],
                       p['bn1_g'], p['bn1_b'], p['bn1_rm'], p['bn1_rv']))
    h = jax.nn.relu(bn(h @ p['w2'] + p['b2'],
                       p['bn2_g'], p['bn2_b'], p['bn2_rm'], p['bn2_rv']))
    h = jax.nn.relu(h @ p['w3'] + p['b3'])
    return h @ p['w4'] + p['b4']


if __name__ == "__main__":
    # Small synthetic shapes: B=2, feature_dim C=32, backbone map 8x8 spatial.
    B, C, H, W = 2, 32, 8, 8
    key = jax.random.PRNGKey(0)
    kx, kp = jax.random.split(key)
    x = jax.random.normal(kx, (B, C, H, W), dtype=jnp.float32)
    params = init_params(kp, C, H, W)

    out = jax.block_until_ready(enhanced_regressor_forward(x, params))
    assert out.shape == (B, 1)

    ref = reference_forward(x, params)
    # bf16 matmul operands with f32 accumulation -> compare at bf16 tolerance.
    if not np.allclose(np.asarray(out), np.asarray(ref), rtol=2e-2, atol=2e-2):
        raise AssertionError(f"mismatch: pallas={np.asarray(out)} ref={np.asarray(ref)}")

    print("KERNEL_OK")
</pallas_src>

<mosaic_0001>
module attributes {stable_mosaic.version = 11 : i64} {
  func.func @_attn_pool_kernel(%arg0: i32, %arg1: memref<2x32x64xbf16, #tpu.memory_space<vmem>>, %arg2: memref<2x32xbf16, #tpu.memory_space<vmem>>, %arg3: memref<1x2x1xf32, #tpu.memory_space<vmem>>, %arg4: memref<32x2xbf16, #tpu.memory_space<vmem>>, %arg5: memref<1x32x1xf32, #tpu.memory_space<vmem>>, %arg6: memref<128x64xbf16, #tpu.memory_space<vmem>>, %arg7: memref<64x24xbf16, #tpu.memory_space<vmem>>, %arg8: memref<2x32x24xbf16, #tpu.memory_space<vmem>>) attributes {dimension_semantics = [#tpu.dimension_semantics<parallel>], iteration_bounds = array<i64: 1>, scalar_prefetch = 0 : i64, scratch_operands = 0 : i64, tpu.core_type = #tpu.core_type<tc>, window_params = [{transform_indices = @transform_0, window_bounds = array<i64: 2, 32, 64>}, {pipeline_mode = #tpu.pipeline_mode<synchronous>, transform_indices = @transform_1, window_bounds = array<i64: 2, 32>}, {pipeline_mode = #tpu.pipeline_mode<synchronous>, transform_indices = @transform_2, window_bounds = array<i64: 1, 2, 1>}, {pipeline_mode = #tpu.pipeline_mode<synchronous>, transform_indices = @transform_3, window_bounds = array<i64: 32, 2>}, {pipeline_mode = #tpu.pipeline_mode<synchronous>, transform_indices = @transform_4, window_bounds = array<i64: 1, 32, 1>}, {pipeline_mode = #tpu.pipeline_mode<synchronous>, transform_indices = @transform_5, window_bounds = array<i64: 128, 64>}, {pipeline_mode = #tpu.pipeline_mode<synchronous>, transform_indices = @transform_6, window_bounds = array<i64: 64, 24>}, {transform_indices = @transform_7, window_bounds = array<i64: 2, 32, 24>}]} {
    %c0 = arith.constant 0 : index
    %c0_0 = arith.constant 0 : index
    %c0_1 = arith.constant 0 : index
    %0 = vector.load %arg1[%c0, %c0_0, %c0_1] : memref<2x32x64xbf16, #tpu.memory_space<vmem>>, vector<2x32x64xbf16>
    %1 = arith.extf %0 : vector<2x32x64xbf16> to vector<2x32x64xf32>
    %cst = arith.constant dense<0.000000e+00> : vector<2x32xf32>
    %2 = vector.multi_reduction <add>, %1, %cst [2] : vector<2x32x64xf32> to vector<2x32xf32>
    %3 = vector.shape_cast %2 : vector<2x32xf32> to vector<2x32x1xf32>
    %cst_2 = arith.constant 6.400000e+01 : f32
    %4 = vector.broadcast %cst_2 : f32 to vector<2x32x1xf32>
    %5 = arith.divf %3, %4 : vector<2x32x1xf32>
    %cst_3 = arith.constant dense<0xFF800000> : vector<2x32xf32>
    %6 = vector.multi_reduction <maximumf>, %1, %cst_3 [2] : vector<2x32x64xf32> to vector<2x32xf32>
    %7 = vector.shape_cast %6 : vector<2x32xf32> to vector<2x32x1xf32>
    %8 = tpu.concatenate %5, %7 in 2 : vector<2x32x1xf32>, vector<2x32x1xf32> -> vector<2x32x2xf32>
    %9 = arith.truncf %8 : vector<2x32x2xf32> to vector<2x32x2xbf16>
    %c0_4 = arith.constant 0 : index
    %c0_5 = arith.constant 0 : index
    %10 = vector.load %arg2[%c0_4, %c0_5] : memref<2x32xbf16, #tpu.memory_space<vmem>>, vector<2x32xbf16>
    %11 = vector.shape_cast %10 : vector<2x32xbf16> to vector<1x2x32xbf16>
    %12 = vector.broadcast %11 : vector<1x2x32xbf16> to vector<2x2x32xbf16>
    "tpu.trace_start"() <{level = 10 : i32, message = "brc,bcx->brx"}> : () -> ()
    %cst_6 = arith.constant dense<0.000000e+00> : vector<2x2x2xf32>
    %13 = tpu.matmul %12, %9, %cst_6 {dimension_numbers = #tpu.dot_dimension_numbers<[2], [1], [1], [2], [0, 0, 0, 1, 1, 2], [0], [0]>} : vector<2x2x32xbf16>, vector<2x32x2xbf16>, vector<2x2x2xf32> -> vector<2x2x2xf32>
    "tpu.trace_stop"() : () -> ()
    %c0_7 = arith.constant 0 : index
    %c0_8 = arith.constant 0 : index
    %c0_9 = arith.constant 0 : index
    %14 = vector.load %arg3[%c0_7, %c0_8, %c0_9] : memref<1x2x1xf32, #tpu.memory_space<vmem>>, vector<1x2x1xf32>
    %15 = vector.broadcast %14 : vector<1x2x1xf32> to vector<2x2x2xf32>
    %16 = arith.addf %13, %15 : vector<2x2x2xf32>
    %cst_10 = arith.constant 0.000000e+00 : f32
    %17 = vector.broadcast %cst_10 : f32 to vector<2x2x2xf32>
    %18 = arith.maximumf %16, %17 : vector<2x2x2xf32>
    %c0_11 = arith.constant 0 : index
    %c0_12 = arith.constant 0 : index
    %19 = vector.load %arg4[%c0_11, %c0_12] : memref<32x2xbf16, #tpu.memory_space<vmem>>, vector<32x2xbf16>
    %20 = vector.shape_cast %19 : vector<32x2xbf16> to vector<1x32x2xbf16>
    %21 = vector.broadcast %20 : vector<1x32x2xbf16> to vector<2x32x2xbf16>
    %22 = arith.truncf %18 : vector<2x2x2xf32> to vector<2x2x2xbf16>
    "tpu.trace_start"() <{level = 10 : i32, message = "bkr,brx->bkx"}> : () -> ()
    %cst_13 = arith.constant dense<0.000000e+00> : vector<2x32x2xf32>
    %23 = tpu.matmul %21, %22, %cst_13 {dimension_numbers = #tpu.dot_dimension_numbers<[2], [1], [1], [2], [0, 0, 0, 1, 1, 2], [0], [0]>} : vector<2x32x2xbf16>, vector<2x2x2xbf16>, vector<2x32x2xf32> -> vector<2x32x2xf32>
    "tpu.trace_stop"() : () -> ()
    %c0_14 = arith.constant 0 : index
    %c0_15 = arith.constant 0 : index
    %c0_16 = arith.constant 0 : index
    %24 = vector.load %arg5[%c0_14, %c0_15, %c0_16] : memref<1x32x1xf32, #tpu.memory_space<vmem>>, vector<1x32x1xf32>
    %25 = vector.broadcast %24 : vector<1x32x1xf32> to vector<2x32x2xf32>
    %26 = arith.addf %23, %25 : vector<2x32x2xf32>
    %27 = vector.extract_strided_slice %26 {offsets = [0, 0, 0], sizes = [2, 32, 1], strides = [1, 1, 1]} : vector<2x32x2xf32> to vector<2x32x1xf32>
    %28 = vector.extract_strided_slice %26 {offsets = [0, 0, 1], sizes = [2, 32, 1], strides = [1, 1, 1]} : vector<2x32x2xf32> to vector<2x32x1xf32>
    %29 = arith.addf %27, %28 : vector<2x32x1xf32>
    %cst_17 = arith.constant 0.000000e+00 : f32
    %30 = vector.broadcast %cst_17 : f32 to vector<2x32x1xf32>
    %31 = arith.subf %30, %29 : vector<2x32x1xf32>
    %32 = math.exp %31 : vector<2x32x1xf32>
    %cst_18 = arith.constant 1.000000e+00 : f32
    %33 = vector.broadcast %cst_18 : f32 to vector<2x32x1xf32>
    %34 = arith.addf %33, %32 : vector<2x32x1xf32>
    %35 = tpu.reciprocal %34 {approx = true} : vector<2x32x1xf32> -> vector<2x32x1xf32>
    %36 = vector.broadcast %35 : vector<2x32x1xf32> to vector<2x32x64xf32>
    %37 = arith.mulf %1, %36 : vector<2x32x64xf32>
    %cst_19 = arith.constant dense<0.000000e+00> : vector<2x64xf32>
    %38 = vector.multi_reduction <add>, %37, %cst_19 [1] : vector<2x32x64xf32> to vector<2x64xf32>
    %39 = vector.shape_cast %38 : vector<2x64xf32> to vector<2x1x64xf32>
    %cst_20 = arith.constant 3.200000e+01 : f32
    %40 = vector.broadcast %cst_20 : f32 to vector<2x1x64xf32>
    %41 = arith.divf %39, %40 : vector<2x1x64xf32>
    %cst_21 = arith.constant dense<0xFF800000> : vector<2x64xf32>
    %42 = vector.multi_reduction <maximumf>, %37, %cst_21 [1] : vector<2x32x64xf32> to vector<2x64xf32>
    %43 = vector.shape_cast %42 : vector<2x64xf32> to vector<2x1x64xf32>
    %44 = tpu.concatenate %41, %43 in 2 : vector<2x1x64xf32>, vector<2x1x64xf32> -> vector<2x1x128xf32>
    %45 = arith.truncf %44 : vector<2x1x128xf32> to vector<2x1x128xbf16>
    %c0_22 = arith.constant 0 : index
    %c0_23 = arith.constant 0 : index
    %46 = vector.load %arg6[%c0_22, %c0_23] : memref<128x64xbf16, #tpu.memory_space<vmem>>, vector<128x64xbf16>
    %47 = vector.shape_cast %46 : vector<128x64xbf16> to vector<1x128x64xbf16>
    %48 = vector.broadcast %47 : vector<1x128x64xbf16> to vector<2x128x64xbf16>
    "tpu.trace_start"() <{level = 10 : i32, message = "bxh,bhp->bxp"}> : () -> ()
    %cst_24 = arith.constant dense<0.000000e+00> : vector<2x1x64xf32>
    %49 = tpu.matmul %45, %48, %cst_24 {dimension_numbers = #tpu.dot_dimension_numbers<[2], [1], [1], [2], [0, 0, 0, 1, 1, 2], [0], [0]>} : vector<2x1x128xbf16>, vector<2x128x64xbf16>, vector<2x1x64xf32> -> vector<2x1x64xf32>
    "tpu.trace_stop"() : () -> ()
    %cst_25 = arith.constant 0.000000e+00 : f32
    %50 = vector.broadcast %cst_25 : f32 to vector<2x1x64xf32>
    %51 = arith.subf %50, %49 : vector<2x1x64xf32>
    %52 = math.exp %51 : vector<2x1x64xf32>
    %cst_26 = arith.constant 1.000000e+00 : f32
    %53 = vector.broadcast %cst_26 : f32 to vector<2x1x64xf32>
    %54 = arith.addf %53, %52 : vector<2x1x64xf32>
    %55 = tpu.reciprocal %54 {approx = true} : vector<2x1x64xf32> -> vector<2x1x64xf32>
    %56 = vector.broadcast %55 : vector<2x1x64xf32> to vector<2x32x64xf32>
    %57 = arith.mulf %37, %56 : vector<2x32x64xf32>
    %c0_27 = arith.constant 0 : index
    %c0_28 = arith.constant 0 : index
    %58 = vector.load %arg7[%c0_27, %c0_28] : memref<64x24xbf16, #tpu.memory_space<vmem>>, vector<64x24xbf16>
    %59 = vector.shape_cast %58 : vector<64x24xbf16> to vector<1x64x24xbf16>
    %60 = vector.broadcast %59 : vector<1x64x24xbf16> to vector<2x64x24xbf16>
    %61 = arith.truncf %57 : vector<2x32x64xf32> to vector<2x32x64xbf16>
    "tpu.trace_start"() <{level = 10 : i32, message = "bch,bhp->bcp"}> : () -> ()
    %cst_29 = arith.constant dense<0.000000e+00> : vector<2x32x24xf32>
    %62 = tpu.matmul %61, %60, %cst_29 {dimension_numbers = #tpu.dot_dimension_numbers<[2], [1], [1], [2], [0, 0, 0, 1, 1, 2], [0], [0]>} : vector<2x32x64xbf16>, vector<2x64x24xbf16>, vector<2x32x24xf32> -> vector<2x32x24xf32>
    "tpu.trace_stop"() : () -> ()
    %63 = arith.truncf %62 : vector<2x32x24xf32> to vector<2x32x24xbf16>
    %c0_30 = arith.constant 0 : index
    %c0_31 = arith.constant 0 : index
    %c0_32 = arith.constant 0 : index
    %64 = vector.load %arg8[%c0_30, %c0_31, %c0_32] : memref<2x32x24xbf16, #tpu.memory_space<vmem>>, vector<2x32x24xbf16>
    tpu.vector_store %arg8[%c0_30, %c0_31, %c0_32], %63 {strides = array<i32>} : memref<2x32x24xbf16, #tpu.memory_space<vmem>>, vector<2x32x24xbf16>,
    return
  }
  func.func @transform_0(%arg0: i32) -> (i32, i32, i32) {
    %c0_i32 = arith.constant 0 : i32
    %c0_i32_0 = arith.constant 0 : i32
    %c0_i32_1 = arith.constant 0 : i32
    return %arg0, %c0_i32, %c0_i32_0 : i32, i32, i32
  }
  func.func @transform_1(%arg0: i32) -> (i32, i32) {
    %c0_i32 = arith.constant 0 : i32
    %c0_i32_0 = arith.constant 0 : i32
    %c0_i32_1 = arith.constant 0 : i32
    return %c0_i32, %c0_i32_0 : i32, i32
  }
  func.func @transform_2(%arg0: i32) -> (i32, i32, i32) {
    %c0_i32 = arith.constant 0 : i32
    %c0_i32_0 = arith.constant 0 : i32
    %c0_i32_1 = arith.constant 0 : i32
    %c0_i32_2 = arith.constant 0 : i32
    return %c0_i32, %c0_i32_0, %c0_i32_1 : i32, i32, i32
  }
  func.func @transform_3(%arg0: i32) -> (i32, i32) {
    %c0_i32 = arith.constant 0 : i32
    %c0_i32_0 = arith.constant 0 : i32
    %c0_i32_1 = arith.constant 0 : i32
    return %c0_i32, %c0_i32_0 : i32, i32
  }
  func.func @transform_4(%arg0: i32) -> (i32, i32, i32) {
    %c0_i32 = arith.constant 0 : i32
    %c0_i32_0 = arith.constant 0 : i32
    %c0_i32_1 = arith.constant 0 : i32
    %c0_i32_2 = arith.constant 0 : i32
    return %c0_i32, %c0_i32_0, %c0_i32_1 : i32, i32, i32
  }
  func.func @transform_5(%arg0: i32) -> (i32, i32) {
    %c0_i32 = arith.constant 0 : i32
    %c0_i32_0 = arith.constant 0 : i32
    %c0_i32_1 = arith.constant 0 : i32
    return %c0_i32, %c0_i32_0 : i32, i32
  }
  func.func @transform_6(%arg0: i32) -> (i32, i32) {
    %c0_i32 = arith.constant 0 : i32
    %c0_i32_0 = arith.constant 0 : i32
    %c0_i32_1 = arith.constant 0 : i32
    return %c0_i32, %c0_i32_0 : i32, i32
  }
  func.func @transform_7(%arg0: i32) -> (i32, i32, i32) {
    %c0_i32 = arith.constant 0 : i32
    %c0_i32_0 = arith.constant 0 : i32
    %c0_i32_1 = arith.constant 0 : i32
    return %arg0, %c0_i32, %c0_i32_0 : i32, i32, i32
  }
}

</mosaic_0001>

<bundles_post_ra>
// kernel: tpu_custom_call.1
= control target key start
LH: loop header
LB: loop body
LE: loop exit
PB: predicated region body
PF: predicated region fallthrough
CT: control target
= control target key end

     0   :  { %vm43_vm0 = vcmask 523264   ;;  %v1176_v24 = vmov 0.0   ;;  %vm1177_vm1 = vmmov 0   ;;  %v1178_v29 = vmov 0   ;;  %s1180_s12 = smov 64   ;;  %s1487_s0 = inlined_call_operand.vmem [shape: bf16[2,32,64], index: 0, kind: input, shape index: {}]   ;;  %s1488_s2 = inlined_call_operand.vmem [shape: f32[1,2,1], index: 2, kind: input, shape index: {}]   ;;  %s1489_s1 = inlined_call_operand.vmem [shape: bf16[2,32], index: 1, kind: input, shape index: {}]   ;;  %s1490_s3 = inlined_call_operand.vmem [shape: bf16[32,2], index: 3, kind: input, shape index: {}]   ;;  %s1491_s4 = inlined_call_operand.vmem [shape: f32[1,32,1], index: 4, kind: input, shape index: {}]   ;;  %s1492_s5 = inlined_call_operand.vmem [shape: bf16[128,64], index: 5, kind: input, shape index: {}]   ;;  %s1493_s6 = inlined_call_operand.vmem [shape: bf16[64,24], index: 6, kind: input, shape index: {}]   ;;  %s1494_s7 = inlined_call_operand.vmem [shape: bf16[2,32,24], index: 7, kind: output, shape index: {}]  }
   0x1   :  { %v973_v0 = vld [vmem:[%s1487_s0 + $0x18] sm:$0xff]   ;;  %v971_v1 = vld [vmem:[%s1487_s0 + $0x8] sm:$0xff]   ;;  %v956_v12 = vld [vmem:[%s1487_s0] sm:$0xff]   ;;  %1016 = vmatprep.subr.bf16.mxu0 %v1176_v24  ;;  %1024 = vmatprep.subr.bf16.mxu1 %v1176_v24  ;;  %vm101_vm2 = vcmask 7168   ;;  %vm121_vm3 = vcmask 261120   ;;  %vm247_vm4 = vcmask 15360  }
   0x2   :  { %v1227_v2 = vunpack.c.l.bf16 %v973_v0  ;;  %v1229_v3 = vunpack.c.l.bf16 %v971_v1  ;;  %v1231_v4 = vunpack.c.h.bf16 %v973_v0  ;;  %v1233_v5 = vunpack.c.h.bf16 %v971_v1  ;;  %v972_v17 = vld [vmem:[%s1487_s0 + $0x10] sm:$0xff]   ;;  %1020 = vmatprep.mubr.msk.bf16.mxu0 %vm1177_vm1, %v1176_v24  ;;  %1028 = vmatprep.mubr.msk.bf16.mxu1 %vm1177_vm1, %v1176_v24  ;;  %v115_v30 = vld [vmem:[%s1488_s2] sm:$0x3] }
   0x3   :  { %v1254_v15 = vunpack.c.h.bf16 %v956_v12  ;;  %v1256_v16 = vunpack.c.l.bf16 %v956_v12  ;;  %v1265_v20 = vunpack.c.h.bf16 %v972_v17  ;;  %v1267_v21 = vunpack.c.l.bf16 %v972_v17  ;;  %1115 = vset.pattern.permute.xlu0 %v1178_v29  ;;  %1116 = vset.pattern.permute.xlu1 %v1178_v29  ;;  %v114_v0 = vld [vmem:[%s1489_s1] sm:$0x1]  ;;  %v216_v12 = vld [vmem:[%s1491_s4 + $0x18] sm:$0xff] }
   0x4   :  { %v62_v6 = vsel %vm43_vm0, %v1227_v2, 0.0  ;;  %v50_v7 = vsel %vm43_vm0, %v1229_v3, 0.0  ;;  %v65_v8 = vsel %vm43_vm0, %v1231_v4, 0.0  ;;  %v53_v9 = vsel %vm43_vm0, %v1233_v5, 0.0 }
   0x5   :  { %63 = vadd.xlane.f32.xlu1 %v62_v6  ;;  %51 = vadd.xlane.f32.xlu0 %v50_v7  ;;  %v86_v10 = vsel %vm43_vm0, %v1233_v5, -inf  ;;  %v83_v11 = vsel %vm43_vm0, %v1229_v3, -inf  ;;  %v98_v13 = vsel %vm43_vm0, %v1231_v4, -inf  ;;  %v95_v14 = vsel %vm43_vm0, %v1227_v2, -inf }
   0x6   :  { %v47_v18 = vsel %vm43_vm0, %v1254_v15, 0.0  ;;  %v44_v19 = vsel %vm43_vm0, %v1256_v16, 0.0  ;;  %v59_v22 = vsel %vm43_vm0, %v1265_v20, 0.0  ;;  %v56_v23 = vsel %vm43_vm0, %v1267_v21, 0.0 }
   0x7   :  { %v80_v25 = vsel %vm43_vm0, %v1254_v15, -inf  ;;  %v77_v26 = vsel %vm43_vm0, %v1256_v16, -inf  ;;  %v92_v27 = vsel %vm43_vm0, %v1265_v20, -inf  ;;  %v89_v28 = vsel %vm43_vm0, %v1267_v21, -inf }
   0x8   :  { %vm254_vm5 = vcmask 1040384   ;;  %vm902_vm6 = vcmask 191488  }
   0x9   :  { %66 = vadd.xlane.f32.xlu1 %v65_v8  ;;  %54 = vadd.xlane.f32.xlu0 %v53_v9  ;;  %v1122_v8 = vld [vmem:[%s1490_s3] sm:$0xff]  }
   0xa   :  { %v213_v9 = vld [vmem:[%s1491_s4] sm:$0xff] }
   0xd   :  { %87 = vmax.xlane.f32.xlu1 %v86_v10  ;;  %84 = vmax.xlane.f32.xlu0 %v83_v11  ;;  %v214_v10 = vld [vmem:[%s1491_s4 + $0x8] sm:$0xff]  ;;  %v215_v11 = vld [vmem:[%s1491_s4 + $0x10] sm:$0xff] }
  0x11   :  { %99 = vmax.xlane.f32.xlu1 %v98_v13  ;;  %96 = vmax.xlane.f32.xlu0 %v95_v14 }
  0x15   :  { %48 = vadd.xlane.f32.xlu1 %v47_v18  ;;  %45 = vadd.xlane.f32.xlu0 %v44_v19 }
  0x19   :  { %60 = vadd.xlane.f32.xlu1 %v59_v22  ;;  %57 = vadd.xlane.f32.xlu0 %v56_v23 }
  0x1d   :  { %81 = vmax.xlane.f32.xlu1 %v80_v25  ;;  %78 = vmax.xlane.f32.xlu0 %v77_v26 }
  0x21   :  { %93 = vmax.xlane.f32.xlu1 %v92_v27  ;;  %90 = vmax.xlane.f32.xlu0 %v89_v28 }
  0x32   :  { %219 = vperm.xlu1 %1116, %v213_v9  }
  0x36   :  { %224 = vperm.xlu1 %1116, %v214_v10  }
  0x37   :  { %118 = vperm.xlu0 %1115, %v115_v30  }
  0x3a   :  { %229 = vperm.xlu1 %1116, %v215_v11  }
  0x3e   :  { %234 = vperm.xlu1 %1116, %v216_v12  }
  0x8e   :  { %v64_v31 = vpop.xlane.xlu1 %63  ;;  %v52_v32 = vpop.xlane.xlu0 %51 }
  0x8f   :  { %v71_v35 = vmul.f32 0.015625, %v52_v32  ;;  %v75_v42 = vmul.f32 0.015625, %v64_v31  ;;  %v1123_v31 = vld [vmem:[%s1490_s3 + $0x8] sm:$0xff]   ;;  %s1179_s3 = smov 127  }
  0x92   :  { %v67_v33 = vpop.xlane.xlu1 %66  ;;  %v55_v34 = vpop.xlane.xlu0 %54 }
  0x93   :  { %v72_v36 = vmul.f32 0.015625, %v55_v34  ;;  %v76_v43 = vmul.f32 0.015625, %v67_v33 }
  0x96   :  { %v88_v37 = vpop.xlane.xlu1 %87  ;;  %v85_v38 = vpop.xlane.xlu0 %84 }
  0x97   :  { %v105_v39 = vsel %vm101_vm2, %v72_v36, %v88_v37  ;;  %v104_v40 = vsel %vm101_vm2, %v71_v35, %v85_v38 }
  0x98   :  { %v111_v41 = vpack.c.bf16 %v105_v39, %v104_v40 }
  0x9a   :  { %v100_v44 = vpop.xlane.xlu1 %99  ;;  %1017 = vmatpush3.bf16.msra.mxu0 %v111_v41  ;;  %v97_v45 = vpop.xlane.xlu0 %96 }
  0x9b   :  { %v109_v46 = vsel %vm101_vm2, %v76_v43, %v100_v44  ;;  %v108_v47 = vsel %vm101_vm2, %v75_v42, %v97_v45  ;;  %1018 = vmatprep.subr.bf16.mxu0 %v1176_v24 }
  0x9c   :  { %v113_v48 = vpack.c.bf16 %v109_v46, %v108_v47 }
  0x9e   :  { %1025 = vmatpush3.bf16.msra.mxu1 %v113_v48  ;;  %v49_v49 = vpop.xlane.xlu1 %48  ;;  %v46_v50 = vpop.xlane.xlu0 %45 }
  0x9f   :  { %1026 = vmatprep.subr.bf16.mxu1 %v1176_v24  ;;  %v70_v53 = vmul.f32 0.015625, %v49_v49  ;;  %v69_v54 = vmul.f32 0.015625, %v46_v50 }
  0xa2   :  { %v61_v51 = vpop.xlane.xlu1 %60  ;;  %v58_v52 = vpop.xlane.xlu0 %57 }
  0xa3   :  { %v74_v60 = vmul.f32 0.015625, %v61_v51  ;;  %v73_v61 = vmul.f32 0.015625, %v58_v52 }
  0xa6   :  { %v82_v55 = vpop.xlane.xlu1 %81  ;;  %v79_v56 = vpop.xlane.xlu0 %78 }
  0xa7   :  { %v103_v57 = vsel %vm101_vm2, %v70_v53, %v82_v55  ;;  %v102_v58 = vsel %vm101_vm2, %v69_v54, %v79_v56 }
  0xa8   :  { %v110_v59 = vpack.c.bf16 %v103_v57, %v102_v58 }
  0xaa   :  { %v94_v62 = vpop.xlane.xlu1 %93  ;;  %1019 = vmatpush3.bf16.msra.mxu0 %v110_v59  ;;  %v91_v63 = vpop.xlane.xlu0 %90 }
  0xab   :  { %v107_v1 = vsel %vm101_vm2, %v74_v60, %v94_v62  ;;  %v106_v6 = vsel %vm101_vm2, %v73_v61, %v91_v63 }
  0xac   :  { %v112_v7 = vpack.c.bf16 %v107_v1, %v106_v6 }
  0xad   :  { %1021 = vmatmul.mubr.msk.bf16.vlgmr.msra.gmra.mxu0 %vm121_vm3, %v114_v0 }
  0xae   :  { %1027 = vmatpush3.bf16.msra.mxu1 %v112_v7  ;;  %1034 = vmatprep.mubr.msk.bf16.mxu0 %vm247_vm4, %v1122_v8  ;;  %v220_v36 = vpop.permute.xlu1 %219 }
  0xb1   :  { %1029 = vmatmul.mubr.msk.bf16.vlgmr.msra.gmra.mxu1 %vm121_vm3, %v114_v0 }
  0xb2   :  { %1040 = vmatprep.mubr.msk.bf16.mxu1 %vm247_vm4, %v1122_v8  ;;  %v119_v13 = vpop.permute.xlu0 %118  ;;  %v225_v37 = vpop.permute.xlu1 %224 }
  0xb6   :  { %v230_v38 = vpop.permute.xlu1 %229 }
  0xba   :  { %v235_v47 = vpop.permute.xlu1 %234 }
 0x16d   :  { %v159_v14 = vpop.f32.mrf.mxu0 }
 0x16e   :  { %v160_v17 = vadd.f32 %v159_v14, %v119_v13 }
 0x16f   :  { %v1022_v18 = vpop.f32.mrf.mxu0 }
 0x170   :  { %v205_v19 = vmax.f32 %v160_v17, 0.0 }
 0x171   :  { %v162_v22 = vpop.f32.mrf.mxu0  ;;  %v199_v23 = vpop.f32.mrf.mxu1 }
 0x172   :  { %v211_v25 = vpack.c.bf16 %v205_v19, %v205_v19  ;;  %v200_v26 = vadd.f32 %v199_v23, %v119_v13 }
 0x173   :  { %v1023_v27 = vpop.f32.mrf.mxu0  ;;  %v1030_v28 = vpop.f32.mrf.mxu1 }
 0x174   :  { %v206_v29 = vmax.f32 %v200_v26, 0.0  ;;  %1108 = vmatprep.subr.msk.bf16.mxu0 %vm254_vm5, %v211_v25  ;;  %v256_v30 = vsel %vm254_vm5, %v211_v25, 0 }
 0x175   :  { %v202_v32 = vpop.f32.mrf.mxu1  ;;  %1033 = vmatpush3.bf16.msra.mxu0 %v256_v30 }
 0x176   :  { %v212_v33 = vpack.c.bf16 %v206_v29, %v206_v29  ;;  %1044 = vmatprep.subr.bf16.mxu0 %v1176_v24 }
 0x177   :  { %v1031_v34 = vpop.f32.mrf.mxu1 }
 0x178   :  { %1035 = vmatmul.mubr.msk.bf16.vlgmr.msra.gmra.mxu0 %vm247_vm4, %v1123_v31  ;;  %1109 = vmatprep.subr.msk.bf16.mxu1 %vm254_vm5, %v212_v33  ;;  %v308_v35 = vsel %vm254_vm5, %v212_v33, 0 }
 0x179   :  { %1039 = vmatpush3.bf16.msra.mxu1 %v308_v35  ;;  %1060 = vmatprep.mubr.msk.bf16.mxu0 %vm1177_vm1, %v1176_v24 }
 0x17a   :  { %1064 = vmatprep.subr.bf16.mxu1 %v1176_v24 }
 0x17c   :  { %1041 = vmatmul.mubr.msk.bf16.vlgmr.msra.gmra.mxu1 %vm247_vm4, %v1123_v31 }
 0x17d   :  { %1080 = vmatprep.mubr.msk.bf16.mxu1 %vm1177_vm1, %v1176_v24 }
 0x238   :  { %v1036_v39 = vpop.f32.mrf.mxu0 }
 0x239   :  { %v301_v40 = vadd.f32 %v1036_v39, %v230_v38 }
 0x23a   :  { %v292_v41 = vpop.f32.mrf.mxu0 }
 0x23b   :  { %371 = vrot.lane.b32.xlu1 %v301_v40, %s1179_s3  ;;  %v293_v43 = vadd.f32 %v292_v41, %v220_v36 }
 0x23c   :  { %v1042_v42 = vpop.f32.mrf.mxu1  ;;  %v1037_v44 = vpop.f32.mrf.mxu0 }
 0x23d   :  { %v304_v48 = vadd.f32 %v1037_v44, %v235_v47  ;;  %v353_v51 = vadd.f32 %v1042_v42, %v230_v38 }
 0x23e   :  { %v344_v45 = vpop.f32.mrf.mxu1  ;;  %v295_v49 = vpop.f32.mrf.mxu0 }
 0x23f   :  { %v345_v46 = vadd.f32 %v344_v45, %v220_v36  ;;  %367 = vrot.lane.b32.xlu1 %v293_v43, %s1179_s3  ;;  %v296_v52 = vadd.f32 %v295_v49, %v225_v37 }
 0x240   :  { %v1043_v50 = vpop.f32.mrf.mxu1 }
 0x241   :  { %375 = vrot.lane.b32.xlu0 %v345_v46, %s1179_s3  ;;  %v356_v55 = vadd.f32 %v1043_v50, %v235_v47 }
 0x242   :  { %v347_v53 = vpop.f32.mrf.mxu1 }
 0x243   :  { %373 = vrot.lane.b32.xlu1 %v304_v48, %s1179_s3  ;;  %v348_v54 = vadd.f32 %v347_v53, %v225_v37 }
 0x245   :  { %379 = vrot.lane.b32.xlu0 %v353_v51, %s1179_s3 }
 0x247   :  { %369 = vrot.lane.b32.xlu1 %v296_v52, %s1179_s3 }
 0x24b   :  { %377 = vrot.lane.b32.xlu1 %v348_v54, %s1179_s3 }
 0x24f   :  { %381 = vrot.lane.b32.xlu1 %v356_v55, %s1179_s3 }
 0x2ad   :  { %v372_v56 = vpop.permute.xlu1 %371 }
 0x2ae   :  { %v393_v57 = vadd.f32 %v372_v56, %v301_v40 }
 0x2b0   :  { %v401_v58 = vsub.f32 0.0, %v393_v57  ;;  %v1124_v57 = vld [vmem:[%s1492_s5 + $0x38] sm:$0xff]  }
 0x2b1   :  { %v368_v59 = vpop.permute.xlu1 %367  ;;  %1045 = vmatpush3.bf16.msra.mxu0 %v1124_v57  ;;  %1065 = vmatpush3.bf16.msra.mxu1 %v1124_v57 }
 0x2b2   :  { %v411_v60 = vmul.f32 1.442695, %v401_v58  ;;  %v391_v61 = vadd.f32 %v368_v59, %v293_v43  ;;  %v1125_v58 = vld [vmem:[%s1492_s5 + $0x30] sm:$0xff]   ;;  %1046 = vmatprep.subr.bf16.mxu0 %v1176_v24  ;;  %1066 = vmatprep.subr.bf16.mxu1 %v1176_v24  ;;  %v1126_v59 = vld [vmem:[%s1492_s5 + $0x28] sm:$0xff]  }
 0x2b3   :  { %v376_v62 = vpop.permute.xlu0 %375 }
 0x2b4   :  { %1136 = vpow2.f32 %v411_v60  ;;  %v399_v63 = vsub.f32 0.0, %v391_v61  ;;  %v395_v0 = vadd.f32 %v376_v62, %v345_v46  ;;  %v1127_v60 = vld [vmem:[%s1492_s5 + $0x20] sm:$0xff]   ;;  %v1128_v61 = vld [vmem:[%s1492_s5 + $0x18] sm:$0xff]   ;;  %v1129_v62 = vld [vmem:[%s1492_s5 + $0x10] sm:$0xff]  }
 0x2b5   :  { %v374_v1 = vpop.permute.xlu1 %373  ;;  %1047 = vmatpush3.bf16.msra.mxu0 %v1125_v58  ;;  %1067 = vmatpush3.bf16.msra.mxu1 %v1125_v58 }
 0x2b6   :  { %v407_v6 = vmul.f32 1.442695, %v399_v63  ;;  %v403_v7 = vsub.f32 0.0, %v395_v0  ;;  %v394_v8 = vadd.f32 %v374_v1, %v304_v48  ;;  %1048 = vmatprep.subr.bf16.mxu0 %v1176_v24  ;;  %1068 = vmatprep.subr.bf16.mxu1 %v1176_v24  ;;  %v1130_v63 = vld [vmem:[%s1492_s5 + $0x8] sm:$0xff]  }
 0x2b7   :  { %v380_v9 = vpop.permute.xlu0 %379 }
 0x2b8   :  { %1138 = vpow2.f32 %v407_v6  ;;  %v415_v10 = vmul.f32 1.442695, %v403_v7  ;;  %v402_v11 = vsub.f32 0.0, %v394_v8  ;;  %v397_v12 = vadd.f32 %v380_v9, %v353_v51 }
 0x2b9   :  { %v370_v13 = vpop.permute.xlu1 %369  ;;  %1049 = vmatpush3.bf16.msra.mxu0 %v1126_v59  ;;  %1069 = vmatpush3.bf16.msra.mxu1 %v1126_v59 }
 0x2ba   :  { %1140 = vpow2.f32 %v415_v10  ;;  %v413_v14 = vmul.f32 1.442695, %v402_v11  ;;  %v405_v17 = vsub.f32 0.0, %v397_v12  ;;  %v392_v18 = vadd.f32 %v370_v13, %v296_v52  ;;  %1050 = vmatprep.subr.bf16.mxu0 %v1176_v24  ;;  %1070 = vmatprep.subr.bf16.mxu1 %v1176_v24 }
 0x2bc   :  { %1142 = vpow2.f32 %v413_v14  ;;  %v419_v19 = vmul.f32 1.442695, %v405_v17  ;;  %v400_v22 = vsub.f32 0.0, %v392_v18 }
 0x2bd   :  { %v378_v23 = vpop.permute.xlu1 %377  ;;  %1051 = vmatpush3.bf16.msra.mxu0 %v1127_v60  ;;  %1071 = vmatpush3.bf16.msra.mxu1 %v1127_v60 }
 0x2be   :  { %1144 = vpow2.f32 %v419_v19  ;;  %v409_v25 = vmul.f32 1.442695, %v400_v22  ;;  %v396_v26 = vadd.f32 %v378_v23, %v348_v54  ;;  %1052 = vmatprep.subr.bf16.mxu0 %v1176_v24  ;;  %1072 = vmatprep.subr.bf16.mxu1 %v1176_v24 }
 0x2c0   :  { %1146 = vpow2.f32 %v409_v25  ;;  %v404_v27 = vsub.f32 0.0, %v396_v26 }
 0x2c1   :  { %v1137_v28 = vpop.eup %1136  ;;  %v382_v29 = vpop.permute.xlu1 %381  ;;  %1053 = vmatpush3.bf16.msra.mxu0 %v1128_v61  ;;  %1073 = vmatpush3.bf16.msra.mxu1 %v1128_v61 }
 0x2c2   :  { %v425_v30 = vadd.f32 1.0, %v1137_v28  ;;  %v417_v31 = vmul.f32 1.442695, %v404_v27  ;;  %v398_v32 = vadd.f32 %v382_v29, %v356_v55  ;;  %1054 = vmatprep.subr.bf16.mxu0 %v1176_v24  ;;  %1074 = vmatprep.subr.bf16.mxu1 %v1176_v24 }
 0x2c4   :  { %1148 = vrcp.f32 %v425_v30  ;;  %v406_v33 = vsub.f32 0.0, %v398_v32 }
 0x2c5   :  { %v1139_v34 = vpop.eup %1138  ;;  %1150 = vpow2.f32 %v417_v31  ;;  %1055 = vmatpush3.bf16.msra.mxu0 %v1129_v62  ;;  %1075 = vmatpush3.bf16.msra.mxu1 %v1129_v62 }
 0x2c6   :  { %v423_v35 = vadd.f32 1.0, %v1139_v34  ;;  %v421_v36 = vmul.f32 1.442695, %v406_v33  ;;  %1056 = vmatprep.subr.bf16.mxu0 %v1176_v24  ;;  %1076 = vmatprep.subr.bf16.mxu1 %v1176_v24 }
 0x2c7   :  { %v1141_v37 = vpop.eup %1140 }
 0x2c8   :  { %1152 = vrcp.f32 %v423_v35  ;;  %v427_v38 = vadd.f32 1.0, %v1141_v37 }
 0x2c9   :  { %v1143_v39 = vpop.eup %1142  ;;  %1154 = vpow2.f32 %v421_v36  ;;  %1057 = vmatpush3.bf16.msra.mxu0 %v1130_v63  ;;  %1077 = vmatpush3.bf16.msra.mxu1 %v1130_v63 }
 0x2ca   :  { %v426_v40 = vadd.f32 1.0, %v1143_v39  ;;  %1156 = vrcp.f32 %v427_v38  ;;  %1058 = vmatprep.subr.bf16.mxu0 %v1176_v24  ;;  %1078 = vmatprep.subr.bf16.mxu1 %v1176_v24 }
 0x2cb   :  { %v1145_v41 = vpop.eup %1144 }
 0x2cc   :  { %1158 = vrcp.f32 %v426_v40  ;;  %v429_v42 = vadd.f32 1.0, %v1145_v41 }
 0x2cd   :  { %v1147_v43 = vpop.eup %1146 }
 0x2ce   :  { %v424_v44 = vadd.f32 1.0, %v1147_v43  ;;  %1160 = vrcp.f32 %v429_v42 }
 0x2d0   :  { %1162 = vrcp.f32 %v424_v44 }
 0x2d1   :  { %v1149_v45 = vpop.eup %1148 }
 0x2d2   :  { %v1151_v46 = vpop.eup %1150  ;;  %451 = vperm.xlu0 %1115, %v1149_v45  }
 0x2d3   :  { %v428_v47 = vadd.f32 1.0, %v1151_v46 }
 0x2d5   :  { %v1153_v48 = vpop.eup %1152  ;;  %1164 = vrcp.f32 %v428_v47 }
 0x2d6   :  { %v1155_v49 = vpop.eup %1154  ;;  %441 = vperm.xlu0 %1115, %v1153_v48  }
 0x2d7   :  { %v430_v50 = vadd.f32 1.0, %v1155_v49  ;;  %v1157_v51 = vpop.eup %1156 }
 0x2d9   :  { %v1159_v52 = vpop.eup %1158  ;;  %1166 = vrcp.f32 %v430_v50 }
 0x2da   :  { %461 = vperm.xlu0 %1115, %v1157_v51   ;;  %456 = vperm.xlu1 %1116, %v1159_v52  }
 0x2db   :  { %v1161_v53 = vpop.eup %1160 }
 0x2dd   :  { %v1163_v54 = vpop.eup %1162 }
 0x2de   :  { %471 = vperm.xlu0 %1115, %v1161_v53   ;;  %446 = vperm.xlu1 %1116, %v1163_v54  }
 0x2e2   :  { %v1165_v55 = vpop.eup %1164 }
 0x2e3   :  { %466 = vperm.xlu1 %1116, %v1165_v55  }
 0x2e6   :  { %v1167_v56 = vpop.eup %1166 }
 0x2e7   :  { %476 = vperm.xlu1 %1116, %v1167_v56  }
 0x34d   :  { %v452_v0 = vpop.permute.xlu0 %451 }
 0x34e   :  { %v1374_v9 = vmul.f32 %v1229_v3, %v452_v0 }
 0x350   :  { %v518_v24 = vsel %vm43_vm0, %v1374_v9, -inf  ;;  %v490_v50 = vsel %vm43_vm0, %v1374_v9, 0.0 }
 0x351   :  { %v442_v1 = vpop.permute.xlu0 %441 }
 0x352   :  { %v1371_v7 = vmul.f32 %v1256_v16, %v442_v1 }
 0x354   :  { %v516_v12 = vsel %vm43_vm0, %v1371_v7, -inf  ;;  %v487_v46 = vsel %vm43_vm0, %v1371_v7, 0.0 }
 0x355   :  { %v457_v6 = vpop.permute.xlu1 %456  ;;  %v462_v8 = vpop.permute.xlu0 %461  ;;  %v519_v17 = vmax.f32 %v516_v12, %v518_v24 }
 0x356   :  { %v1377_v10 = vmul.f32 %v1233_v5, %v457_v6 }
 0x358   :  { %v520_v16 = vsel %vm43_vm0, %v1377_v10, -inf  ;;  %v492_v55 = vsel %vm43_vm0, %v1377_v10, 0.0 }
 0x359   :  { %v447_v11 = vpop.permute.xlu1 %446  ;;  %v472_v14 = vpop.permute.xlu0 %471 }
 0x35a   :  { %v1382_v13 = vmul.f32 %v1254_v15, %v447_v11  ;;  %v1391_v19 = vmul.f32 %v1227_v2, %v472_v14  ;;  %v1394_v15 = vmul.f32 %v1267_v21, %v462_v8 }
 0x35c   :  { %v517_v3 = vsel %vm43_vm0, %v1382_v13, -inf  ;;  %v531_v27 = vsel %vm43_vm0, %v1391_v19, -inf  ;;  %v529_v2 = vsel %vm43_vm0, %v1394_v15, -inf  ;;  %v488_v44 = vsel %vm43_vm0, %v1382_v13, 0.0 }
 0x35d   :  { %v521_v5 = vmax.f32 %v517_v3, %v520_v16  ;;  %v532_v31 = vmax.f32 %v529_v2, %v531_v27  ;;  %v500_v47 = vsel %vm43_vm0, %v1394_v15, 0.0  ;;  %v489_v48 = vadd.f32 %v488_v44, %v487_v46  ;;  %v1133_v27 = vld [vmem:[%s1493_s6 + $0x10] sm:$0xff]   ;;  %v1135_v2 = vld [vmem:[%s1493_s6] sm:$0xff]  }
 0x35e   :  { %v467_v18 = vpop.permute.xlu1 %466  ;;  %v503_v51 = vsel %vm43_vm0, %v1391_v19, 0.0 }
 0x35f   :  { %v522_v22 = vmax.f32 %v519_v17, %v521_v5  ;;  %v1397_v25 = vmul.f32 %v1265_v20, %v467_v18  ;;  %v491_v52 = vadd.f32 %v490_v50, %v489_v48 }
 0x361   :  { %v523_v23 = vrot.slane %v522_v22, 4  ;;  %v530_v30 = vsel %vm43_vm0, %v1397_v25, -inf  ;;  %v501_v45 = vsel %vm43_vm0, %v1397_v25, 0.0  ;;  %v493_v56 = vadd.f32 %v492_v55, %v491_v52 }
 0x362   :  { %v477_v26 = vpop.permute.xlu1 %476  ;;  %v502_v49 = vadd.f32 %v501_v45, %v500_v47 }
 0x363   :  { %v1402_v28 = vmul.f32 %v1231_v4, %v477_v26  ;;  %v524_v29 = vmax.f32 %v522_v22, %v523_v23  ;;  %v1131_v4 = vld [vmem:[%s1492_s5] sm:$0xff]   ;;  %v494_v58 = vrot.slane %v493_v56, 4  ;;  %v1132_v26 = vld [vmem:[%s1493_s6 + $0x18] sm:$0xff]  }
 0x364   :  { %1059 = vmatpush3.bf16.msra.mxu0 %v1131_v4  ;;  %1079 = vmatpush3.bf16.msra.mxu1 %v1131_v4  ;;  %v504_v53 = vadd.f32 %v503_v51, %v502_v49 }
 0x365   :  { %v533_v21 = vsel %vm43_vm0, %v1402_v28, -inf  ;;  %v525_v33 = vrot.slane %v524_v29, 2  ;;  %v505_v54 = vsel %vm43_vm0, %v1402_v28, 0.0  ;;  %v495_v60 = vadd.f32 %v494_v58, %v493_v56  ;;  %1084 = vmatprep.subr.bf16.mxu0 %v1132_v26  ;;  %1096 = vmatprep.subr.bf16.mxu1 %v1132_v26 }
 0x366   :  { %v534_v20 = vmax.f32 %v530_v30, %v533_v21  ;;  %v506_v57 = vadd.f32 %v505_v54, %v504_v53 }
 0x367   :  { %v526_v35 = vmax.f32 %v524_v29, %v525_v33  ;;  %v496_v63 = vrot.slane %v495_v60, 2  ;;  %v1134_v29 = vld [vmem:[%s1493_s6 + $0x8] sm:$0xff]  }
 0x368   :  { %v535_v32 = vmax.f32 %v532_v31, %v534_v20  ;;  %v507_v59 = vrot.slane %v506_v57, 4 }
 0x369   :  { %v527_v38 = vrot.slane %v526_v35, 1  ;;  %v497_v1 = vadd.f32 %v496_v63, %v495_v60 }
 0x36a   :  { %v536_v34 = vrot.slane %v535_v32, 4  ;;  %v508_v61 = vadd.f32 %v507_v59, %v506_v57 }
 0x36b   :  { %v528_v41 = vmax.f32 %v526_v35, %v527_v38  ;;  %v498_v6 = vrot.slane %v497_v1, 1 }
 0x36c   :  { %v537_v36 = vmax.f32 %v535_v32, %v536_v34  ;;  %v509_v62 = vrot.slane %v508_v61, 2 }
 0x36d   :  { %v499_v11 = vadd.f32 %v498_v6, %v497_v1 }
 0x36e   :  { %v538_v37 = vrot.slane %v537_v36, 2  ;;  %v510_v0 = vadd.f32 %v509_v62, %v508_v61 }
 0x36f   :  { %v514_v16 = vmul.f32 0.03125, %v499_v11 }
 0x370   :  { %v539_v39 = vmax.f32 %v537_v36, %v538_v37  ;;  %v511_v8 = vrot.slane %v510_v0, 1 }
 0x372   :  { %v540_v40 = vrot.slane %v539_v39, 1  ;;  %v512_v12 = vadd.f32 %v511_v8, %v510_v0 }
 0x374   :  { %v541_v42 = vmax.f32 %v539_v39, %v540_v40  ;;  %v515_v17 = vmul.f32 0.03125, %v512_v12 }
 0x376   :  { %v1117_v43 = vpack.i.bf16 %v541_v42, %v528_v41 }
 0x378   :  { %1118 = vrot.lane.b32.xlu0 %v1117_v43, %s1180_s12  ;;  %v708_v43 = vlaneseq }
 0x37a   :  { %v709_v44 = vshrl.u32 %v708_v43, 7 }
 0x37c   :  { %v710_v45 = vsub.s32 0, %v709_v44 }
 0x3ea   :  { %v1119_v24 = vpop.permute.xlu0 %1118 }
 0x3eb   :  { %v1121_v14 = vunpack.i.h.bf16 %v1119_v24  ;;  %v1120_v3 = vunpack.i.l.bf16 %v1119_v24 }
 0x3ed   :  { %v550_v5 = vsel %vm43_vm0, %v514_v16, %v1120_v3  ;;  %v551_v18 = vsel %vm43_vm0, %v515_v17, %v1121_v14 }
 0x3ee   :  { %v552_v22 = vpack.c.bf16 %v550_v5, %v550_v5  ;;  %v553_v23 = vpack.c.bf16 %v551_v18, %v551_v18 }
 0x3f0   :  { %1061 = vmatmul.mubr.bf16.vlgmr.msra.gmra.mxu0 %v552_v22  ;;  %1081 = vmatmul.mubr.bf16.vlgmr.msra.gmra.mxu1 %v553_v23 }
 0x3f1   :  { %1085 = vmatpush3.bf16.msra.mxu0 %v1132_v26  ;;  %1097 = vmatpush3.bf16.msra.mxu1 %v1132_v26 }
 0x3f2   :  { %1086 = vmatprep.subr.bf16.mxu0 %v1133_v27  ;;  %1098 = vmatprep.subr.bf16.mxu1 %v1133_v27 }
 0x3f5   :  { %1087 = vmatpush3.bf16.msra.mxu0 %v1133_v27  ;;  %1099 = vmatpush3.bf16.msra.mxu1 %v1133_v27 }
 0x3f6   :  { %1088 = vmatprep.subr.bf16.mxu0 %v1134_v29  ;;  %1100 = vmatprep.subr.bf16.mxu1 %v1134_v29 }
 0x3f9   :  { %1089 = vmatpush3.bf16.msra.mxu0 %v1134_v29  ;;  %1101 = vmatpush3.bf16.msra.mxu1 %v1134_v29 }
 0x3fa   :  { %1090 = vmatprep.subr.bf16.mxu0 %v1135_v2  ;;  %1102 = vmatprep.subr.bf16.mxu1 %v1135_v2 }
 0x3fd   :  { %1091 = vmatpush3.bf16.msra.mxu0 %v1135_v2  ;;  %1103 = vmatpush3.bf16.msra.mxu1 %v1135_v2 }
 0x4b0   :  { %v652_v30 = vpop.f32.mrf.mxu0  ;;  %v692_v21 = vpop.f32.mrf.mxu1 }
 0x4b1   :  { %v698_v31 = vsub.f32 0.0, %v652_v30  ;;  %v699_v20 = vsub.f32 0.0, %v692_v21 }
 0x4b2   :  { %v1062_v32 = vpop.f32.mrf.mxu0  ;;  %v1082_v33 = vpop.f32.mrf.mxu1 }
 0x4b3   :  { %v700_v34 = vmul.f32 1.442695, %v698_v31  ;;  %v702_v4 = vmul.f32 1.442695, %v699_v20 }
 0x4b4   :  { %v655_v35 = vpop.f32.mrf.mxu0  ;;  %v695_v36 = vpop.f32.mrf.mxu1 }
 0x4b5   :  { %1168 = vpow2.f32 %v700_v34 }
 0x4b6   :  { %1170 = vpow2.f32 %v702_v4  ;;  %v1063_v37 = vpop.f32.mrf.mxu0  ;;  %v1083_v38 = vpop.f32.mrf.mxu1 }
 0x4c2   :  { %v1169_v39 = vpop.eup %1168 }
 0x4c3   :  { %v1171_v40 = vpop.eup %1170  ;;  %v704_v41 = vadd.f32 1.0, %v1169_v39 }
 0x4c4   :  { %v705_v42 = vadd.f32 1.0, %v1171_v40 }
 0x4c5   :  { %1172 = vrcp.f32 %v704_v41 }
 0x4c6   :  { %1174 = vrcp.f32 %v705_v42 }
 0x4d2   :  { %v1173_v46 = vpop.eup %1172 }
 0x4d3   :  { %v1175_v47 = vpop.eup %1174  ;;  %v711_v48 = vrot.slane %v1173_v46, %v710_v45 }
 0x4d4   :  { %v715_v49 = vrot.slane %v1175_v47, %v710_v45 }
 0x4d5   :  { %v716_v50 = vmul.f32 %v711_v48, %v1371_v7  ;;  %v717_v51 = vmul.f32 %v711_v48, %v1382_v13  ;;  %v718_v52 = vmul.f32 %v711_v48, %v1374_v9  ;;  %v719_v53 = vmul.f32 %v711_v48, %v1377_v10 }
 0x4d6   :  { %v720_v54 = vmul.f32 %v715_v49, %v1394_v15  ;;  %v721_v55 = vmul.f32 %v715_v49, %v1397_v25  ;;  %v722_v56 = vmul.f32 %v715_v49, %v1391_v19  ;;  %v723_v57 = vmul.f32 %v715_v49, %v1402_v28 }
 0x4d7   :  { %v732_v58 = vpack.c.bf16 %v717_v51, %v716_v50  ;;  %v733_v59 = vpack.c.bf16 %v719_v53, %v718_v52 }
 0x4d8   :  { %v734_v60 = vpack.c.bf16 %v721_v55, %v720_v54  ;;  %v735_v61 = vpack.c.bf16 %v723_v57, %v722_v56 }
 0x4d9   :  { %1092 = vmatprep.mubr.msk.bf16.mxu0 %vm43_vm0, %v732_v58 }
 0x4da   :  { %1104 = vmatprep.mubr.msk.bf16.mxu1 %vm43_vm0, %v734_v60  ;;  %1093 = vmatmul.mubr.msk.bf16.vlgmr.msra.gmra.mxu0 %vm43_vm0, %v733_v59 }
 0x4db   :  { %1105 = vmatmul.mubr.msk.bf16.vlgmr.msra.gmra.mxu1 %vm43_vm0, %v735_v61 }
 0x59a   :  { %v1094_v7 = vpop.f32.mrf.mxu0 }
 0x59b   :  { %v949_v9 = vpack.c.bf16 %v1094_v7, %v1094_v7  ;;  %v1106_v10 = vpop.f32.mrf.mxu1 }
 0x59c   :  { %v953_v13 = vpack.c.bf16 %v1106_v10, %v1106_v10  ;;  %v800_v19 = vpop.f32.mrf.mxu0 }
 0x59d   :  { %905 = vst.msk [vmem:[%s1494_s7 + $0x8] sm:$0xf] %vm902_vm6, %v949_v9  ;;  %v947_v15 = vpack.c.bf16 %v800_v19, %v800_v19  ;;  %v855_v25 = vpop.f32.mrf.mxu1 }
 0x59e   :  { %909 = vst.msk [vmem:[%s1494_s7 + $0x18] sm:$0xf] %vm902_vm6, %v953_v13  ;;  %v951_v28 = vpack.c.bf16 %v855_v25, %v855_v25  ;;  %v1095_v62 = vpop.f32.mrf.mxu0 }
 0x59f   :  { %903 = vst.msk [vmem:[%s1494_s7] sm:$0xf] %vm902_vm6, %v947_v15  ;;  %v950_v63 = vpack.c.bf16 %v1095_v62, %v1095_v62  ;;  %v1107_v0 = vpop.f32.mrf.mxu1 }
 0x5a0   :  { %907 = vst.msk [vmem:[%s1494_s7 + $0x10] sm:$0xf] %vm902_vm6, %v951_v28  ;;  %v954_v1 = vpack.c.bf16 %v1107_v0, %v1107_v0  ;;  %v803_v6 = vpop.f32.mrf.mxu0 }
 0x5a1   :  { %906 = vst.msk [vmem:[%s1494_s7 + $0xc] sm:$0xf] %vm902_vm6, %v950_v63  ;;  %v948_v8 = vpack.c.bf16 %v803_v6, %v803_v6  ;;  %v858_v11 = vpop.f32.mrf.mxu1 }
 0x5a2   :  { %910 = vst.msk [vmem:[%s1494_s7 + $0x1c] sm:$0xf] %vm902_vm6, %v954_v1  ;;  %v952_v12 = vpack.c.bf16 %v858_v11, %v858_v11 }
 0x5a3   :  { %904 = vst.msk [vmem:[%s1494_s7 + $0x4] sm:$0xf] %vm902_vm6, %v948_v8 }
 0x5a4   :  { %908 = vst.msk [vmem:[%s1494_s7 + $0x14] sm:$0xf] %vm902_vm6, %v952_v12 }

</bundles_post_ra>
